<compile_context>
chip_gen: v5e
topology: v5e:2x2
jax: 0.10.0
libtpu: 0.0.40
codegen_flags: <defaults>
</compile_context>

<pallas_src>
import functools

import jax
import jax.numpy as jnp
from jax.experimental import pallas as pl
from jax.experimental.pallas import tpu as pltpu

_LANES = 128
_SUBLANES = 8


def _round_up(x, m):
    return ((x + m - 1) // m) * m


def _vmem_plan():
    """Generation-aware (tile budget, vmem_limit_bytes)."""
    vmem_cap = 64 << 20  # conservative default == v7x per-TC VMEM
    try:
        vmem_cap = int(pltpu.get_tpu_info().vmem_capacity_bytes)
    except Exception:
        pass
    if vmem_cap >= (100 << 20):        # v5e / v6e: 128 MiB physical VMEM
        return 48 << 20, 96 << 20
    # v7x (64 MiB per TC) or unknown: stay well under physical capacity.
    return 24 << 20, 48 << 20


def _choose_tile_s(s_valid, c, itemsize, budget_bytes, cap=2048):
    """Pick a sublane-tile size (multiple of 8) for the spatial axis.

    Accounts for double-buffered inputs in their native dtype plus ~4 live
    f32 [tile_s,128] intermediates (per-channel accumulation keeps the f32
    working set independent of C).
    """
    per_sublane = (c + 2) * _LANES * itemsize * 2 + 4 * _LANES * 4
    max_s = max(_SUBLANES, (budget_bytes // per_sublane) // _SUBLANES * _SUBLANES)
    max_s = min(max_s, cap)
    return min(_round_up(max(s_valid, 1), _SUBLANES), max_s)


def _loss_kernel(prob_ref, cost_ref, tgt_ref, loss_ref, *, tile_s, s_valid, num_ch):
    # prob_ref: [1, C, tile_s, 128]; cost_ref/tgt_ref: [1, tile_s, 128]
    # loss_ref: [1, 1, 8, 128] partial sums for this (batch, spatial-tile) step.
    cost = cost_ref[0].astype(jnp.float32)          # [tile_s, 128]
    tgt = tgt_ref[0].astype(jnp.float32)            # [tile_s, 128]

    # sum_c(|cost - tgt| * prob_c) == |cost - tgt| * sum_c(prob_c)   (exact)
    # Per-channel accumulation: only one f32 [tile_s,128] accumulator live,
    # never a full [C,tile_s,128] f32 copy.  f32 accumulation keeps the same
    # numerics on every TPU generation (v5e has no bf16 VALU).
    prob_sum = prob_ref[0, 0].astype(jnp.float32)
    for c in range(1, num_ch):
        prob_sum = prob_sum + prob_ref[0, c].astype(jnp.float32)

    per_pixel = jnp.abs(cost - tgt) * prob_sum      # [tile_s, 128]  (VPU)

    # Index-based tail mask: the ragged last spatial tile is an edge block
    # whose out-of-range contents are undefined, so mask by global sublane
    # index, not by tgt alone.
    row0 = pl.program_id(1) * tile_s
    rows = jax.lax.broadcasted_iota(jnp.int32, (tile_s, _LANES), 0) + row0
    mask = jnp.logical_and(rows < s_valid, tgt > 0.0)
    masked_loss = jnp.where(mask, per_pixel, 0.0)

    # Fold sublanes down to a single (8,128) vreg — pure VPU adds, no XLU,
    # lane-dense unmasked store.  (tile_s is always a multiple of 8.)
    loss_ref[0, 0, :, :] = jnp.sum(
        masked_loss.reshape(tile_s // _SUBLANES, _SUBLANES, _LANES), axis=0)


def l1_loss_class_prob_masked(output_prob, output_cost, targets,
                              *, assume_prob_normalized=False):
    """output_prob: (N, C, H, W); output_cost, targets: (N, 1, H, W)."""
    N, C, H, W = output_prob.shape
    HW = H * W

    # Count comes from the small targets plane directly (no kernel output
    # stream needed for it).
    count = jnp.sum((targets > 0.0).astype(jnp.float32))

    if assume_prob_normalized:
        # sum_c(p_c) == 1  ->  loss is the masked mean of |cost - tgt|;
        # prob never has to be read (HBM traffic drops from C+2 to 2 planes).
        diff = jnp.abs(output_cost.astype(jnp.float32)
                       - targets.astype(jnp.float32))
        return jnp.sum(jnp.where(targets > 0.0, diff, 0.0)) / count

    # Pad the flattened spatial axis only to a multiple of 8*128 so it can be
    # laid out sublane-dense as (S, 128) with S % 8 == 0.  For the common
    # case (HW already a multiple of 1024) this is a free reshape — no copy
    # of the dominant prob tensor.  Padded tgt is zero -> excluded by tgt>0.
    hw_pad = _round_up(HW, _SUBLANES * _LANES)
    pad = hw_pad - HW
    S = hw_pad // _LANES

    prob = output_prob.reshape(N, C, HW)
    cost = output_cost.reshape(N, HW)
    tgt = targets.reshape(N, HW)
    if pad:
        prob = jnp.pad(prob, ((0, 0), (0, 0), (0, pad)))
        cost = jnp.pad(cost, ((0, 0), (0, pad)))
        tgt = jnp.pad(tgt, ((0, 0), (0, pad)))
    prob = prob.reshape(N, C, S, _LANES)
    cost = cost.reshape(N, S, _LANES)
    tgt = tgt.reshape(N, S, _LANES)

    itemsize = jnp.dtype(output_prob.dtype).itemsize
    budget_bytes, vmem_limit = _vmem_plan()
    tile_s = _choose_tile_s(S, C, itemsize, budget_bytes)
    T = pl.cdiv(S, tile_s)

    kernel = functools.partial(_loss_kernel, tile_s=tile_s, s_valid=S, num_ch=C)

    partial_loss = pl.pallas_call(
        kernel,
        out_shape=jax.ShapeDtypeStruct((N, T, _SUBLANES, _LANES), jnp.float32),
        grid_spec=pltpu.PrefetchScalarGridSpec(
            num_scalar_prefetch=0,
            grid=(N, T),
            in_specs=[
                pl.BlockSpec((1, C, tile_s, _LANES), lambda b, t: (b, 0, t, 0)),
                pl.BlockSpec((1, tile_s, _LANES), lambda b, t: (b, t, 0)),
                pl.BlockSpec((1, tile_s, _LANES), lambda b, t: (b, t, 0)),
            ],
            out_specs=pl.BlockSpec((1, 1, _SUBLANES, _LANES),
                                   lambda b, t: (b, t, 0, 0)),
        ),
        compiler_params=pltpu.CompilerParams(
            # Every step writes its own partial block -> fully parallel grid
            # (lets v7x megacore shard both axes; near-neutral on v5e/v6e).
            dimension_semantics=("parallel", "parallel"),
            vmem_limit_bytes=vmem_limit,
        ),
    )(prob, cost, tgt)

    # Tiny final reduction + divide in plain JAX.
    # NOTE: count == 0 (no targets > 0) yields NaN, matching
    # torch.masked_select(...).mean() on an empty selection.
    return jnp.sum(partial_loss) / count


def _reference(output_prob, output_cost, targets):
    shape = output_prob.shape
    cur_loss = jnp.abs(jnp.broadcast_to(output_cost, shape)
                       - jnp.broadcast_to(targets, shape))
    weighted = cur_loss * output_prob
    summed = jnp.sum(weighted, axis=1, keepdims=True)          # (N,1,H,W)
    mask = targets > 0.0
    sel_sum = jnp.sum(jnp.where(mask, summed, 0.0))
    sel_cnt = jnp.sum(mask.astype(jnp.float32))
    return sel_sum / sel_cnt


if __name__ == "__main__":
    key = jax.random.PRNGKey(0)
    k1, k2, k3 = jax.random.split(key, 3)

    N, C, H, W = 2, 4, 16, 16
    logits = jax.random.normal(k1, (N, C, H, W), dtype=jnp.float32)
    output_prob = jax.nn.softmax(logits, axis=1)                      # (N,C,H,W)
    output_cost = jax.random.uniform(k2, (N, 1, H, W), dtype=jnp.float32)
    # targets with a mix of positive and non-positive values
    targets = jax.random.uniform(k3, (N, 1, H, W), dtype=jnp.float32,
                                 minval=-0.5, maxval=1.0)

    out = l1_loss_class_prob_masked(output_prob, output_cost, targets)
    out = jax.block_until_ready(out)

    ref = _reference(output_prob, output_cost, targets)
    assert jnp.allclose(out, ref, rtol=1e-5, atol=1e-6), (out, ref)

    print("KERNEL_OK")
</pallas_src>

<mosaic_0001>
module attributes {stable_mosaic.version = 11 : i64} {
  func.func @_loss_kernel(%arg0: i32, %arg1: i32, %arg2: memref<1x4x8x128xf32, #tpu.memory_space<vmem>>, %arg3: memref<1x8x128xf32, #tpu.memory_space<vmem>>, %arg4: memref<1x8x128xf32, #tpu.memory_space<vmem>>, %arg5: memref<1x1x8x128xf32, #tpu.memory_space<vmem>>) attributes {dimension_semantics = [#tpu.dimension_semantics<parallel>, #tpu.dimension_semantics<parallel>], iteration_bounds = array<i64: 2, 1>, scalar_prefetch = 0 : i64, scratch_operands = 0 : i64, tpu.core_type = #tpu.core_type<tc>, window_params = [{transform_indices = @transform_0, window_bounds = array<i64: 1, 4, 8, 128>}, {transform_indices = @transform_1, window_bounds = array<i64: 1, 8, 128>}, {transform_indices = @transform_2, window_bounds = array<i64: 1, 8, 128>}, {transform_indices = @transform_3, window_bounds = array<i64: 1, 1, 8, 128>}]} {
    %c0 = arith.constant 0 : index
    %c0_0 = arith.constant 0 : index
    %c0_1 = arith.constant 0 : index
    %0 = vector.load %arg3[%c0, %c0_0, %c0_1] : memref<1x8x128xf32, #tpu.memory_space<vmem>>, vector<1x8x128xf32>
    %1 = vector.shape_cast %0 : vector<1x8x128xf32> to vector<8x128xf32>
    %c0_2 = arith.constant 0 : index
    %c0_3 = arith.constant 0 : index
    %c0_4 = arith.constant 0 : index
    %2 = vector.load %arg4[%c0_2, %c0_3, %c0_4] : memref<1x8x128xf32, #tpu.memory_space<vmem>>, vector<1x8x128xf32>
    %3 = vector.shape_cast %2 : vector<1x8x128xf32> to vector<8x128xf32>
    %c0_5 = arith.constant 0 : index
    %c0_6 = arith.constant 0 : index
    %c0_7 = arith.constant 0 : index
    %c0_8 = arith.constant 0 : index
    %4 = vector.load %arg2[%c0_5, %c0_6, %c0_7, %c0_8] : memref<1x4x8x128xf32, #tpu.memory_space<vmem>>, vector<1x1x8x128xf32>
    %5 = vector.shape_cast %4 : vector<1x1x8x128xf32> to vector<8x128xf32>
    %c0_9 = arith.constant 0 : index
    %c1 = arith.constant 1 : index
    %c0_10 = arith.constant 0 : index
    %c0_11 = arith.constant 0 : index
    %6 = vector.load %arg2[%c0_9, %c1, %c0_10, %c0_11] : memref<1x4x8x128xf32, #tpu.memory_space<vmem>>, vector<1x1x8x128xf32>
    %7 = vector.shape_cast %6 : vector<1x1x8x128xf32> to vector<8x128xf32>
    %8 = arith.addf %5, %7 : vector<8x128xf32>
    %c0_12 = arith.constant 0 : index
    %c2 = arith.constant 2 : index
    %c0_13 = arith.constant 0 : index
    %c0_14 = arith.constant 0 : index
    %9 = vector.load %arg2[%c0_12, %c2, %c0_13, %c0_14] : memref<1x4x8x128xf32, #tpu.memory_space<vmem>>, vector<1x1x8x128xf32>
    %10 = vector.shape_cast %9 : vector<1x1x8x128xf32> to vector<8x128xf32>
    %11 = arith.addf %8, %10 : vector<8x128xf32>
    %c0_15 = arith.constant 0 : index
    %c3 = arith.constant 3 : index
    %c0_16 = arith.constant 0 : index
    %c0_17 = arith.constant 0 : index
    %12 = vector.load %arg2[%c0_15, %c3, %c0_16, %c0_17] : memref<1x4x8x128xf32, #tpu.memory_space<vmem>>, vector<1x1x8x128xf32>
    %13 = vector.shape_cast %12 : vector<1x1x8x128xf32> to vector<8x128xf32>
    %14 = arith.addf %11, %13 : vector<8x128xf32>
    %15 = arith.subf %1, %3 : vector<8x128xf32>
    %16 = math.absf %15 : vector<8x128xf32>
    %17 = arith.mulf %16, %14 : vector<8x128xf32>
    %c8_i32 = arith.constant 8 : i32
    %18 = arith.muli %arg1, %c8_i32 : i32
    %19 = tpu.iota {dimensions = array<i32: 0>} : vector<8x128xi32>
    %20 = vector.broadcast %18 : i32 to vector<8x128xi32>
    %21 = arith.addi %19, %20 : vector<8x128xi32>
    %c8_i32_18 = arith.constant 8 : i32
    %22 = vector.broadcast %c8_i32_18 : i32 to vector<8x128xi32>
    %23 = arith.cmpi slt, %21, %22 : vector<8x128xi32>
    %cst = arith.constant 0.000000e+00 : f32
    %24 = vector.broadcast %cst : f32 to vector<8x128xf32>
    %25 = arith.cmpf ogt, %3, %24 : vector<8x128xf32>
    %26 = arith.andi %23, %25 : vector<8x128xi1>
    %cst_19 = arith.constant 0.000000e+00 : f32
    %27 = vector.broadcast %cst_19 : f32 to vector<8x128xf32>
    %28 = arith.select %26, %17, %27 : vector<8x128xi1>, vector<8x128xf32>
    %29 = vector.shape_cast %28 : vector<8x128xf32> to vector<1x8x128xf32>
    %cst_20 = arith.constant dense<0.000000e+00> : vector<8x128xf32>
    %30 = vector.multi_reduction <add>, %29, %cst_20 [0] : vector<1x8x128xf32> to vector<8x128xf32>
    %c0_21 = arith.constant 0 : index
    %c0_22 = arith.constant 0 : index
    %c0_23 = arith.constant 0 : index
    %c0_24 = arith.constant 0 : index
    %31 = vector.load %arg5[%c0_21, %c0_22, %c0_23, %c0_24] : memref<1x1x8x128xf32, #tpu.memory_space<vmem>>, vector<1x1x8x128xf32>
    %32 = vector.shape_cast %31 : vector<1x1x8x128xf32> to vector<8x128xf32>
    %33 = vector.shape_cast %30 : vector<8x128xf32> to vector<1x1x8x128xf32>
    tpu.vector_store %arg5[%c0_21, %c0_22, %c0_23, %c0_24], %33 {strides = array<i32>} : memref<1x1x8x128xf32, #tpu.memory_space<vmem>>, vector<1x1x8x128xf32>,
    return
  }
  func.func @transform_0(%arg0: i32, %arg1: i32) -> (i32, i32, i32, i32) {
    %c0_i32 = arith.constant 0 : i32
    %c0_i32_0 = arith.constant 0 : i32
    %c0_i32_1 = arith.constant 0 : i32
    return %arg0, %c0_i32, %arg1, %c0_i32_0 : i32, i32, i32, i32
  }
  func.func @transform_1(%arg0: i32, %arg1: i32) -> (i32, i32, i32) {
    %c0_i32 = arith.constant 0 : i32
    %c0_i32_0 = arith.constant 0 : i32
    return %arg0, %arg1, %c0_i32 : i32, i32, i32
  }
  func.func @transform_2(%arg0: i32, %arg1: i32) -> (i32, i32, i32) {
    %c0_i32 = arith.constant 0 : i32
    %c0_i32_0 = arith.constant 0 : i32
    return %arg0, %arg1, %c0_i32 : i32, i32, i32
  }
  func.func @transform_3(%arg0: i32, %arg1: i32) -> (i32, i32, i32, i32) {
    %c0_i32 = arith.constant 0 : i32
    %c0_i32_0 = arith.constant 0 : i32
    %c0_i32_1 = arith.constant 0 : i32
    return %arg0, %arg1, %c0_i32, %c0_i32_0 : i32, i32, i32, i32
  }
}

</mosaic_0001>

<bundles_post_ra>
// kernel: tpu_custom_call.1
= control target key start
LH: loop header
LB: loop body
LE: loop exit
PB: predicated region body
PF: predicated region fallthrough
CT: control target
= control target key end

     0   :  { %s919_s0 = inlined_call_operand.hbm [shape: f32[2,4,8,128], index: 0, kind: input, shape index: {}]   ;;  %s920_s1 = inlined_call_operand.hbm [shape: f32[2,8,128], index: 1, kind: input, shape index: {}]   ;;  %s921_s2 = inlined_call_operand.hbm [shape: f32[2,8,128], index: 2, kind: input, shape index: {}]   ;;  %s922_s3 = inlined_call_operand.hbm [shape: f32[2,1,8,128], index: 3, kind: output, shape index: {}]  }
   0x1   :  { %926 = sst [smem:[#allocation15_spill]] %s920_s1 }
   0x2   :  { %927 = sst [smem:[#allocation16_spill]] %s921_s2 }
   0x3   :  { %8 = vsyncpa [#allocation3], 0 }
   0x4   :  { %10 = vsyncpa [#allocation3 + $0x1], 0 }
   0x5   :  { %11 = vsyncpa [#allocation6], 0 }
   0x6   :  { %13 = vsyncpa [#allocation6 + $0x1], 0 }
   0x7   :  { %14 = vsyncpa [#allocation4], 0 }
   0x8   :  { %16 = vsyncpa [#allocation4 + $0x1], 0  ;;  %s756_s12 = smov 0   ;;  %s758_s13 = smov 0  }
   0x9   :  { %s760_s14 = smov 0   ;;  %s762_s15 = smov 0  }
   0xa   :  { %s764_s16 = smov 0   ;;  %s766_s17 = smov 0  }
   0xb LB: > { %928 = sst [smem:[#allocation12_spill]] %s720_s14  ;;  %s787_s18 = sadd.s32 4294967295, %s732_s17   ;;  %s732_s17 = sphi %s766_s17, %s22_s17   ;;  %s728_s16 = sphi %s764_s16, %s946_s16   ;;  %s724_s15 = sphi %s762_s15, %s945_s15   ;;  %s720_s14 = sphi %s760_s14, %s941_s14   ;;  %s716_s13 = sphi %s758_s13, %s944_s13   ;;  %s712_s12 = sphi %s756_s12, %s943_s12  }
   0xc   : > { %s459_s19 = sadd.s32 4294967294, %s732_s17   ;;  %s34_s20 = sadd.s32 1, %s728_s16 }
   0xd   : > { %s43_s21 = sadd.s32 1, %s720_s14  ;;  %p36_p0 = scmp.ge.s32.totalorder %s34_s20, 2 }
   0xe   : > { %p50_p1 = scmp.ne.s32.totalorder %s720_s14, %s716_s13  ;;  %p51_p2 = scmp.eq.s32.totalorder %s732_s17, 0 }
   0xf   : > { %p56_p3 = scmp.ne.s32.totalorder %s716_s13, %s712_s12  ;;  %s948_s20 = smov (%p36_p0, %s34_s20), 0 }
  0x10   : > { %929 = sst [smem:[#allocation13_spill]] %s948_s20  ;;  %p799_p4 = por %p51_p2, %p50_p1 }
  0x11   : > { %p57_p5 = scmp.eq.s32.totalorder %s787_s18, 0  ;;  %s38_s23 = ssub.s32 %s728_s16, %s948_s20 }
  0x12   : > { %p138_p6 = scmp.eq.s32.totalorder %s787_s18, 1  ;;  %p41_p7 = scmp.eq.s32.totalorder %s38_s23, 0 }
  0x13   : > { %p807_p8 = por %p57_p5, %p56_p3  ;;  %p144_p10 = scmp.eq.s32.totalorder %s459_s19, 1 }
  0x14   : > { %p811_p9 = por %p138_p6, %p50_p1  ;;  %p461_p12 = scmp.ge.s32.totalorder %s732_s17, 2 }
  0x15   : > { %s816_s26 = scalar_select %p41_p7, %s720_s14, %s43_s21  }
  0x16   : > { %p818_p11 = por %p144_p10, %p56_p3  ;;  %p504_p13 = scmp.lt.s32.totalorder %s732_s17, 2 }
  0x17   : > { %933 = sst [smem:[#allocation14_spill]] %s816_s26  ;;  %s825_s28 = sand.u32 1, %s720_s14  }
  0x18   : > { %s187_s29 = sand.u32 1, %s732_s17   ;;  %s923_s30 = sshll.u32 %s825_s28, 3 }
  0x19   : > { %p831_p0 = pnand %p504_p13, %p799_p4  ;;  %s466_s5 = sshll.u32 %s728_s16, 3 }
  0x1a   : > { %s936_s1 = sld [smem:[#allocation15_spill]]  ;;  %s191_s10 = scalar_lea.vmem [#allocation5], %s923_s30 }
  0x1b   : > { %s200_s11 = sshll.u32 %s191_s10, 4  ;;  %s188_s19 = scalar_lea.sflag [#allocation6], %s187_s29  ;;  %s201_s11 = int_to_ptr.vmem [resolvable:$true] %s200_s11 }
  0x1c   : > { %s937_s2 = sld [smem:[#allocation16_spill]]  ;;  %p469_p1 = scmp.ge.s32.totalorder %s732_s17, 1 }
  0x1d   : > { %p225_p2 = scmp.lt.s32.totalorder %s732_s17, 3  ;;  %s462_s7 = sshll.u32 %s825_s28, 5 }
  0x1e   : > { %s734_s21 = smov 128   ;;  %s735_s22 = smov 8  }
  0x1f   : > { %p848_p3 = pnand %p469_p1, %p225_p2  ;;  %s939_s20 = sshll.u32 %s825_s28, 3 }
  0x20   : > { %s196_s8 = scalar_lea.hbm %s936_s1, %s466_s5  ;;  %s211_s26 = scalar_lea.vmem [#allocation7], %s939_s20 }
  0x21   : > { %s198_s9 = sshll.u32 %s196_s8, 4  ;;  %s481_s8 = sshll.u32 %s728_s16, 5  ;;  %s199_s9 = int_to_ptr.hbm [resolvable:$true] %s198_s9 }
  0x22   : > { %496 = dma.hbm_to_vmem [thread:$0]  (!%p831_p0), %s199_s9, 128, %s201_s11, %s188_s19  }
  0x23   : > { %s216_s23 = scalar_lea.hbm %s937_s2, %s466_s5  ;;  %s174_s29 = scalar_lea.hbm %s919_s0, %s481_s8 }
  0x24   : > { %s175_s9 = sshll.u32 %s174_s29, 4  ;;  %s168_s11 = scalar_lea.vmem [#allocation2], %s462_s7  ;;  %s176_s9 = int_to_ptr.hbm [resolvable:$true] %s175_s9 }
  0x25   : > { %s177_s1 = sshll.u32 %s168_s11, 4  ;;  %s165_s5 = scalar_lea.sflag [#allocation3], %s825_s28  ;;  %s178_s1 = int_to_ptr.vmem [resolvable:$true] %s177_s1 }
  0x26   : > { %493 = dma.hbm_to_vmem [thread:$0]  (!%p831_p0), %s176_s9, 512, %s178_s1, %s165_s5, %s734_s21, %s734_s21, %s735_s22  }
  0x27   : > { %s218_s2 = sshll.u32 %s216_s23, 4  ;;  %s220_s14 = sshll.u32 %s211_s26, 4  ;;  %s219_s2 = int_to_ptr.hbm [resolvable:$true] %s218_s2  ;;  %s221_s14 = int_to_ptr.vmem [resolvable:$true] %s220_s14 }
  0x28   : > { %499 = dma.hbm_to_vmem [thread:$0]  (!%p831_p0), %s219_s2, 128, %s221_s14, %s188_s19  }
  0x29   : > { %229 = sbr.rel (%p848_p3) target bundleno = 65 (0x41), region = 32  ;;  %s867_s30 = sand.u32 (!%p848_p3), 1, %s716_s13  }
  0x2a   : > { %s470_s7 = sshll.u32 (!%p848_p3), %s867_s30, 5  ;;  %s232_s8 = scalar_lea.sflag (!%p848_p3), [#allocation3], %s867_s30 }
  0x2b   : > { %s235_s1 = scalar_lea.vmem (!%p848_p3), [#allocation2], %s470_s7 }
  0x2e   : > { %699 = dma.done.wait (%p807_p8), %s232_s8, 512  }
  0x2f   : > { %701 = vsyncadd (%p807_p8), %s232_s8, 4294966784  ;;  %s241_s2 = sand.u32 1, %s787_s18   ;;  %s471_s14 = sshll.u32 %s867_s30, 3 }
  0x30   : > { %s242_s20 = scalar_lea.sflag [#allocation6], %s241_s2  ;;  %s245_s26 = scalar_lea.vmem [#allocation5], %s471_s14 }
  0x31   : > { %703 = dma.done.wait (%p807_p8), %s242_s20, 256  }
  0x32   : > { %705 = vsyncadd (%p807_p8), %s242_s20, 4294967040  ;;  %v289_v0 = vld [vmem:[%s245_s26] sm:$0xff]  ;;  %s255_s28 = scalar_lea.vmem [#allocation7], %s471_s14  ;;  %s478_s4 = sshll.u32 %s724_s15, 3  ;;  %v475_v4 = vld [vmem:[%s235_s1 + $0x10] sm:$0xff] }
  0x33   : > { %v290_v1 = vld [vmem:[%s255_s28] sm:$0xff]  ;;  %v291_v2 = vld [vmem:[%s235_s1] sm:$0xff]  ;;  %v474_v3 = vld [vmem:[%s235_s1 + $0x8] sm:$0xff]  ;;  %s327_s23 = scalar_lea.hbm %s922_s3, %s478_s4  ;;  %s288_s24 = scalar_lea.vmem [#allocation8], %s471_s14 }
  0x34   : > { %v301_v5 = vsub.f32 %v289_v0, %v290_v1  ;;  %v294_v6 = vadd.f32 %v474_v3, %v291_v2  ;;  %v476_v7 = vld [vmem:[%s235_s1 + $0x18] sm:$0xff]  ;;  %s329_s6 = sshll.u32 %s288_s24, 4  ;;  %s331_s10 = sshll.u32 %s327_s23, 4  ;;  %vm310_vm0 = vcmp.gt.f32.partialorder %v290_v1, 0.0  ;;  %s330_s6 = int_to_ptr.vmem [resolvable:$true] %s329_s6  ;;  %s332_s10 = int_to_ptr.hbm [resolvable:$true] %s331_s10 }
  0x35   : > { %s316_s15 = scalar_lea.sflag [#allocation4], %s867_s30  ;;  %s660_s29 = sshra.s32 %s332_s10, 4  ;;  %s661_s29 = int_to_ptr.hbm [resolvable:$true] %s660_s29 }
  0x36   : > { %v297_v8 = vadd.f32 %v475_v4, %v294_v6  ;;  %v302_v9 = vand.u32 2147483647, %v301_v5  ;;  %s662_s9 = scalar_lea.hbm %s661_s29, 8  ;;  %s666_s21 = scalar_lea.hbm %s922_s3, 16 }
  0x37   : > { %p663_p4 = scmp.ne.s32.totalorder %s661_s29, %s662_s9  ;;  %p667_p7 = scmp.lt.s32.totalorder %s661_s29, %s922_s3 }
  0x38   : > { %v300_v10 = vadd.f32 %v476_v7, %v297_v8  ;;  %p668_p8 = scmp.lt.s32.totalorder %s666_s21, %s662_s9 }
  0x39   : > { %p664_p5 = pnand %p663_p4, %p811_p9 }
  0x3a   : > { %v303_v11 = vmul.f32 %v302_v9, %v300_v10  ;;  %p669_p10 = por %p668_p8, %p667_p7 }
  0x3b   : > { %p665_p6 = pneg %p664_p5 }
  0x3c   : > { %v312_v12 = vsel %vm310_vm0, %v303_v11, 0.0 }
  0x3d   : > { %314 = vst [vmem:[%s288_s24] sm:$0xff] %v312_v12  ;;  %p670_p13 = pnand %p669_p10, %p665_p6 }
  0x3f   : > { %673 = shalt.err (!%p670_p13)
}
  0x40   : > { %488 = dma.vmem_to_hbm [thread:$0]  (%p811_p9), %s330_s6, 128, %s332_s10, %s316_s15  }
  0x41 PF: > { %s343_s30 = sand.u32 1, %s712_s12   ;;  %p501_p0 = pnand %p461_p12, %p818_p11 }
  0x42   : > { %s344_s8 = scalar_lea.sflag [#allocation4], %s343_s30 }
  0x43   : > { %p502_p1 = pneg %p501_p0 }
  0x45   : > { %707 = dma.done.wait (%p502_p1), %s344_s8, 128  }
  0x46   : > { %709 = vsyncadd (%p502_p1), %s344_s8, 4294967168  ;;  %s22_s17 = sadd.s32 1, %s732_s17   ;;  %s940_s1 = sld [smem:[#allocation12_spill]] }
  0x47   : > { %p19_p2 = scmp.ge.s32.totalorder %s22_s17, 4   ;;  %s941_s14 = sld [smem:[#allocation14_spill]] }
  0x48   : > { %s942_s25 = sld [smem:[#allocation13_spill]]  ;;  %s943_s12 = smov %s716_s13 }
  0x49   : > { %s945_s15 = smov %s728_s16 }
  0x4a   :  { %21 = sbr.rel (!%p19_p2) target bundleno = 11 (0xb), region = 104 }
  0x4c   : > { %s944_s13 = smov %s940_s1 }
  0x4e   : > { %s946_s16 = smov %s942_s25 }
  0x4f   :  { %350 = vsyncpa [#allocation3], 1 }
  0x50   :  { %352 = vsyncpa [#allocation3 + $0x1], 1 }
  0x51   :  { %353 = vsyncpa [#allocation6], 1 }
  0x52   :  { %355 = vsyncpa [#allocation6 + $0x1], 1 }
  0x53   :  { %356 = vsyncpa [#allocation4], 1 }
  0x54   :  { %358 = vsyncpa [#allocation4 + $0x1], 1 }

</bundles_post_ra>
